<compile_context>
chip_gen: v7x
topology: tpu7x:2x2x1
jax: 0.10.0
libtpu: 0.0.40
codegen_flags: <defaults>
</compile_context>

<pallas_src>
import functools

import jax
import jax.numpy as jnp
from jax.experimental import pallas as pl
from jax.experimental.pallas import tpu as pltpu


def _round_up(x, m):
    return (x + m - 1) // m * m


# ----------------------------------------------------------------------------
# Kernel
# ----------------------------------------------------------------------------
def _focal_loss_kernel(pred_ref, tgt_ref, loss_ref, mask_ref, *, gamma, alpha):
    """Per-tile sigmoid focal loss.

    pred_ref, tgt_ref : (TN, C) VMEM tiles (native dtype, upcast inside)
    loss_ref          : (1, TN) lane-dense per-sample loss (sum over classes)
    mask_ref          : (1, TN) lane-dense per-sample ignore mask
    """
    x = pred_ref[...].astype(jnp.float32)   # (TN, C)
    t = tgt_ref[...].astype(jnp.float32)    # (TN, C)  (target.type_as(pred))

    # Shared transcendental: e = exp(-|x|) drives both sigmoid and stable BCE.
    e = jnp.exp(-jnp.abs(x))
    inv_1pe = 1.0 / (1.0 + e)
    sig = jnp.where(x >= 0.0, inv_1pe, e * inv_1pe)        # sigmoid(x)

    pt = (1.0 - sig) * t + sig * (1.0 - t)

    # pt ** gamma, specialized for small integer gamma (default 2.0 -> pt*pt,
    # avoids exp(gamma*log(pt)) and the log(0) hazard for saturated sigmoids).
    g = float(gamma)
    if g == 0.0:
        pt_pow = jnp.ones_like(pt)
    elif g == float(int(g)) and 0 < int(g) <= 4:
        pt_pow = pt
        for _ in range(int(g) - 1):
            pt_pow = pt_pow * pt
    else:
        pt_pow = pt ** g
    focal_w = (alpha * t + (1.0 - alpha) * (1.0 - t)) * pt_pow

    # F.binary_cross_entropy_with_logits(pred, tgt, reduction='none'),
    # numerically stable form reusing e = exp(-|x|).
    bce = jnp.maximum(x, 0.0) - x * t + jnp.log1p(e)

    # ignore_mask = (target.sum(-1) > 0); applied to the per-row sum (equivalent
    # to masking each element, but saves a full-width multiply).
    ignore = (jnp.sum(t, axis=-1) > 0.0).astype(jnp.float32)   # (TN,)
    per_row = jnp.sum(bce * focal_w, axis=-1) * ignore         # (TN,)

    loss_ref[0, :] = per_row
    mask_ref[0, :] = ignore


# ----------------------------------------------------------------------------
# Python wrappers (glue)
# ----------------------------------------------------------------------------
def py_sigmoid_focal_loss(pred, target, weight=None, gamma=2.0, alpha=0.25,
                          reduction='mean', avg_factor=None, *, tile_n=None):
    """JAX/Pallas port of mmdet's py_sigmoid_focal_loss (forward only)."""
    del avg_factor  # reference implementation overrides it with ignore_mask.sum()
    n, c = pred.shape

    # Auto-size the row tile: keep 2 inputs x 2 pipeline buffers under ~8 MiB
    # of VMEM (comfortably inside the scoped default on v5e/v6e/v7x).
    if tile_n is None:
        itemsize = max(jnp.dtype(pred.dtype).itemsize, jnp.dtype(target.dtype).itemsize)
        cap = (8 * 1024 * 1024) // (4 * c * itemsize)
        cap = max(128, (cap // 128) * 128)
        tile_n = min(1024, cap)

    n_pad = _round_up(n, 8)
    if n_pad <= tile_n:
        tile_n = n_pad                      # single tile covering all rows
    else:
        tile_n = _round_up(tile_n, 128)     # keep output blocks lane-dense
        n_pad = _round_up(n, tile_n)
    num_tiles = n_pad // tile_n

    if n_pad != n:
        # Zero-padded rows have all-zero targets, so the ignore mask removes
        # them from both the loss sum and the avg_factor.
        pred = jnp.pad(pred, ((0, n_pad - n), (0, 0)))
        target = jnp.pad(target, ((0, n_pad - n), (0, 0)))

    kernel = functools.partial(_focal_loss_kernel, gamma=float(gamma), alpha=float(alpha))

    loss2d, mask2d = pl.pallas_call(
        kernel,
        out_shape=(
            jax.ShapeDtypeStruct((num_tiles, tile_n), jnp.float32),
            jax.ShapeDtypeStruct((num_tiles, tile_n), jnp.float32),
        ),
        grid=(num_tiles,),
        in_specs=[
            pl.BlockSpec((tile_n, c), lambda i: (i, 0)),
            pl.BlockSpec((tile_n, c), lambda i: (i, 0)),
        ],
        out_specs=(
            pl.BlockSpec((1, tile_n), lambda i: (i, 0)),
            pl.BlockSpec((1, tile_n), lambda i: (i, 0)),
        ),
        compiler_params=pltpu.CompilerParams(dimension_semantics=("parallel",)),
    )(pred, target)

    loss = loss2d.reshape(n_pad)[:n]        # (N,) per-sample loss
    mask_sum = jnp.sum(mask2d)              # avg_factor = ignore_mask.sum()
                                            # (padded rows contribute 0)

    # weight_reduce_loss(loss, weight, reduction, ignore_mask.sum())
    if weight is not None:
        loss = loss * weight.astype(loss.dtype)

    if reduction == 'mean':
        return jnp.sum(loss) / mask_sum
    elif reduction == 'none':
        return loss
    else:
        # mmdet raises: 'avg_factor can not be used with reduction="sum"'
        raise ValueError('avg_factor can not be used with reduction="sum"')


class FocalLoss:
    """JAX port of mmdet FocalLoss (forward only, sigmoid variant)."""

    def __init__(self, use_sigmoid=True, gamma=2.0, alpha=0.25,
                 reduction='mean', loss_weight=1.0):
        assert use_sigmoid is True, 'Only sigmoid focal loss supported now.'
        self.use_sigmoid = use_sigmoid
        self.gamma = gamma
        self.alpha = alpha
        self.reduction = reduction
        self.loss_weight = loss_weight  # note: reference forward does NOT apply it

    def __call__(self, pred, target, weight=None, avg_factor=None,
                 reduction_override=None):
        assert reduction_override in (None, 'none', 'mean', 'sum')
        reduction = reduction_override if reduction_override else self.reduction

        # Special branch: integer label target with a different last dim ->
        # build a multi-hot target (plain-JAX glue, matches the torch code).
        if (pred.ndim == target.ndim and pred.shape[-1] != target.shape[-1]
                and jnp.issubdtype(target.dtype, jnp.integer)):
            num_class = pred.shape[-1]
            num_attr_per_obj = float(target.shape[-1])
            onehot = jax.nn.one_hot(target, num_classes=num_class, dtype=jnp.float32)
            onehot = onehot.sum(axis=1)
            bg = onehot[..., -1:]
            bg = bg * (bg > num_attr_per_obj - 1e-05).astype(jnp.float32)
            bg = jnp.clip(bg, 0.0, 1.0)
            target = jnp.concatenate([onehot[..., :-1], bg], axis=-1)
            pred = pred[..., :-1]
            target = target[..., :-1]

        loss_cls = py_sigmoid_focal_loss(pred, target, weight,
                                         gamma=self.gamma, alpha=self.alpha,
                                         reduction=reduction, avg_factor=avg_factor)
        # Reference forward returns loss_cls without multiplying loss_weight.
        return loss_cls


# ----------------------------------------------------------------------------
# Pure-JAX reference (torch semantics, for verification only)
# ----------------------------------------------------------------------------
def _ref_focal_loss(pred, target, gamma=2.0, alpha=0.25):
    pred = pred.astype(jnp.float32)
    target = target.astype(jnp.float32)
    ps = jax.nn.sigmoid(pred)
    pt = (1 - ps) * target + ps * (1 - target)
    fw = (alpha * target + (1 - alpha) * (1 - target)) * (pt ** gamma)
    bce = jnp.maximum(pred, 0.0) - pred * target + jnp.log1p(jnp.exp(-jnp.abs(pred)))
    ignore = (target.sum(-1, keepdims=True) > 0).astype(jnp.float32)
    loss = (bce * fw * ignore).sum(-1)
    return loss.sum() / ignore.sum()


# ----------------------------------------------------------------------------
# Main
# ----------------------------------------------------------------------------
if __name__ == "__main__":
    key = jax.random.PRNGKey(0)
    k1, k2, k3 = jax.random.split(key, 3)

    N, C = 64, 16  # N samples (anchors), C classes
    pred = jax.random.normal(k1, (N, C), dtype=jnp.float32) * 2.0
    # multi-hot float target; zero out some rows to exercise the ignore mask
    target = (jax.random.uniform(k2, (N, C)) > 0.7).astype(jnp.float32)
    row_keep = (jax.random.uniform(k3, (N, 1)) > 0.25).astype(jnp.float32)
    target = target * row_keep

    loss_mod = FocalLoss(use_sigmoid=True, gamma=2.0, alpha=0.25, reduction='mean')
    loss = loss_mod(pred, target)
    loss = jax.block_until_ready(loss)

    ref = _ref_focal_loss(pred, target)
    assert jnp.allclose(loss, ref, rtol=1e-4, atol=1e-5), (loss, ref)

    # also exercise the 'none' reduction path (per-sample losses)
    loss_none = jax.block_until_ready(
        loss_mod(pred, target, reduction_override='none'))
    assert loss_none.shape == (N,)

    print("KERNEL_OK")
</pallas_src>

<mosaic_0001>
module attributes {stable_mosaic.version = 11 : i64} {
  func.func @_focal_loss_kernel(%arg0: i32, %arg1: memref<64x16xf32, #tpu.memory_space<vmem>>, %arg2: memref<64x16xf32, #tpu.memory_space<vmem>>, %arg3: memref<1x64xf32, #tpu.memory_space<vmem>>, %arg4: memref<1x64xf32, #tpu.memory_space<vmem>>) attributes {dimension_semantics = [#tpu.dimension_semantics<parallel>], iteration_bounds = array<i64: 1>, scalar_prefetch = 0 : i64, scratch_operands = 0 : i64, tpu.core_type = #tpu.core_type<tc>, window_params = [{transform_indices = @transform_0, window_bounds = array<i64: 64, 16>}, {transform_indices = @transform_1, window_bounds = array<i64: 64, 16>}, {transform_indices = @transform_2, window_bounds = array<i64: 1, 64>}, {transform_indices = @transform_3, window_bounds = array<i64: 1, 64>}]} {
    %c0 = arith.constant 0 : index
    %c0_0 = arith.constant 0 : index
    %0 = vector.load %arg1[%c0, %c0_0] : memref<64x16xf32, #tpu.memory_space<vmem>>, vector<64x16xf32>
    %c0_1 = arith.constant 0 : index
    %c0_2 = arith.constant 0 : index
    %1 = vector.load %arg2[%c0_1, %c0_2] : memref<64x16xf32, #tpu.memory_space<vmem>>, vector<64x16xf32>
    %2 = math.absf %0 : vector<64x16xf32>
    %cst = arith.constant 0.000000e+00 : f32
    %3 = vector.broadcast %cst : f32 to vector<64x16xf32>
    %4 = arith.subf %3, %2 : vector<64x16xf32>
    %5 = math.exp %4 : vector<64x16xf32>
    %cst_3 = arith.constant 1.000000e+00 : f32
    %6 = vector.broadcast %cst_3 : f32 to vector<64x16xf32>
    %7 = arith.addf %6, %5 : vector<64x16xf32>
    %cst_4 = arith.constant 1.000000e+00 : f32
    %8 = vector.broadcast %cst_4 : f32 to vector<64x16xf32>
    %9 = arith.divf %8, %7 : vector<64x16xf32>
    %cst_5 = arith.constant 0.000000e+00 : f32
    %10 = vector.broadcast %cst_5 : f32 to vector<64x16xf32>
    %11 = arith.cmpf oge, %0, %10 : vector<64x16xf32>
    %12 = arith.mulf %5, %9 : vector<64x16xf32>
    %13 = arith.select %11, %9, %12 : vector<64x16xi1>, vector<64x16xf32>
    %cst_6 = arith.constant 1.000000e+00 : f32
    %14 = vector.broadcast %cst_6 : f32 to vector<64x16xf32>
    %15 = arith.subf %14, %13 : vector<64x16xf32>
    %16 = arith.mulf %15, %1 : vector<64x16xf32>
    %cst_7 = arith.constant 1.000000e+00 : f32
    %17 = vector.broadcast %cst_7 : f32 to vector<64x16xf32>
    %18 = arith.subf %17, %1 : vector<64x16xf32>
    %19 = arith.mulf %13, %18 : vector<64x16xf32>
    %20 = arith.addf %16, %19 : vector<64x16xf32>
    %21 = arith.mulf %20, %20 : vector<64x16xf32>
    %cst_8 = arith.constant 2.500000e-01 : f32
    %22 = vector.broadcast %cst_8 : f32 to vector<64x16xf32>
    %23 = arith.mulf %22, %1 : vector<64x16xf32>
    %cst_9 = arith.constant 1.000000e+00 : f32
    %24 = vector.broadcast %cst_9 : f32 to vector<64x16xf32>
    %25 = arith.subf %24, %1 : vector<64x16xf32>
    %cst_10 = arith.constant 7.500000e-01 : f32
    %26 = vector.broadcast %cst_10 : f32 to vector<64x16xf32>
    %27 = arith.mulf %26, %25 : vector<64x16xf32>
    %28 = arith.addf %23, %27 : vector<64x16xf32>
    %29 = arith.mulf %28, %21 : vector<64x16xf32>
    %cst_11 = arith.constant 0.000000e+00 : f32
    %30 = vector.broadcast %cst_11 : f32 to vector<64x16xf32>
    %31 = arith.maximumf %0, %30 : vector<64x16xf32>
    %32 = arith.mulf %0, %1 : vector<64x16xf32>
    %33 = arith.subf %31, %32 : vector<64x16xf32>
    %34 = math.log1p %5 : vector<64x16xf32>
    %35 = arith.addf %33, %34 : vector<64x16xf32>
    %cst_12 = arith.constant dense<0.000000e+00> : vector<64xf32>
    %36 = vector.multi_reduction <add>, %1, %cst_12 [1] : vector<64x16xf32> to vector<64xf32>
    %cst_13 = arith.constant 0.000000e+00 : f32
    %37 = vector.broadcast %cst_13 : f32 to vector<64xf32>
    %38 = arith.cmpf ogt, %36, %37 : vector<64xf32>
    %39 = arith.extui %38 : vector<64xi1> to vector<64xi32>
    %40 = arith.sitofp %39 : vector<64xi32> to vector<64xf32>
    %41 = arith.mulf %35, %29 : vector<64x16xf32>
    %cst_14 = arith.constant dense<0.000000e+00> : vector<64xf32>
    %42 = vector.multi_reduction <add>, %41, %cst_14 [1] : vector<64x16xf32> to vector<64xf32>
    %43 = arith.mulf %42, %40 : vector<64xf32>
    %c0_15 = arith.constant 0 : index
    %c0_16 = arith.constant 0 : index
    %44 = vector.load %arg3[%c0_15, %c0_16] : memref<1x64xf32, #tpu.memory_space<vmem>>, vector<1x64xf32>
    %45 = vector.shape_cast %44 : vector<1x64xf32> to vector<64xf32>
    %46 = vector.shape_cast %43 : vector<64xf32> to vector<1x64xf32>
    tpu.vector_store %arg3[%c0_15, %c0_16], %46 {strides = array<i32>} : memref<1x64xf32, #tpu.memory_space<vmem>>, vector<1x64xf32>,
    %c0_17 = arith.constant 0 : index
    %c0_18 = arith.constant 0 : index
    %47 = vector.load %arg4[%c0_17, %c0_18] : memref<1x64xf32, #tpu.memory_space<vmem>>, vector<1x64xf32>
    %48 = vector.shape_cast %47 : vector<1x64xf32> to vector<64xf32>
    %49 = vector.shape_cast %40 : vector<64xf32> to vector<1x64xf32>
    tpu.vector_store %arg4[%c0_17, %c0_18], %49 {strides = array<i32>} : memref<1x64xf32, #tpu.memory_space<vmem>>, vector<1x64xf32>,
    return
  }
  func.func @transform_0(%arg0: i32) -> (i32, i32) {
    %c0_i32 = arith.constant 0 : i32
    %c0_i32_0 = arith.constant 0 : i32
    return %arg0, %c0_i32 : i32, i32
  }
  func.func @transform_1(%arg0: i32) -> (i32, i32) {
    %c0_i32 = arith.constant 0 : i32
    %c0_i32_0 = arith.constant 0 : i32
    return %arg0, %c0_i32 : i32, i32
  }
  func.func @transform_2(%arg0: i32) -> (i32, i32) {
    %c0_i32 = arith.constant 0 : i32
    %c0_i32_0 = arith.constant 0 : i32
    return %arg0, %c0_i32 : i32, i32
  }
  func.func @transform_3(%arg0: i32) -> (i32, i32) {
    %c0_i32 = arith.constant 0 : i32
    %c0_i32_0 = arith.constant 0 : i32
    return %arg0, %c0_i32 : i32, i32
  }
}

</mosaic_0001>

<bundles_post_ra>
// kernel: tpu_custom_call.1
= control target key start
LH: loop header
LB: loop body
LE: loop exit
PB: predicated region body
PF: predicated region fallthrough
CT: control target
= control target key end

     0   :  { %9 = vsyncpa [#allocation3], 0  ;;  %vm295_vm0 = vcmask 130048   ;;  %s1078_s0 = inlined_call_operand.vmem [shape: f32[64,16], index: 0, kind: input, shape index: {}]   ;;  %s1079_s1 = inlined_call_operand.vmem [shape: f32[64,16], index: 1, kind: input, shape index: {}]   ;;  %s1080_s2 = inlined_call_operand.hbm [shape: f32[1,64], index: 2, kind: output, shape index: {0}]   ;;  %s1081_s3 = inlined_call_operand.hbm [shape: f32[1,64], index: 3, kind: output, shape index: {1}]  }
   0x1   :  { %v660_v0 = vld [vmem:[%s1079_s1] sm:$0xff]  ;;  %v665_v1 = vld [vmem:[%s1079_s1 + $0x8] sm:$0xff]  ;;  %v672_v3 = vld [vmem:[%s1079_s1 + $0x10] sm:$0xff] }
   0x2   :  { %v296_v2 = vsel %vm295_vm0, %v660_v0, 0.0  ;;  %v677_v4 = vld [vmem:[%s1079_s1 + $0x18] sm:$0xff]  ;;  %v302_v5 = vsel %vm295_vm0, %v672_v3, 0.0  ;;  %v684_v6 = vld [vmem:[%s1078_s0 + $0x8] sm:$0xff]  ;;  %v299_v7 = vsel %vm295_vm0, %v665_v1, 0.0  ;;  %v692_v9 = vld [vmem:[%s1078_s0] sm:$0xff] }
   0x3   :  { %297 = vadd.xlane.f32.xlu0 %v296_v2  ;;  %303 = vadd.xlane.f32.xlu1 %v302_v5  ;;  %v32_v8 = vand.u32 2147483647, %v684_v6  ;;  %v697_v10 = vld [vmem:[%s1079_s1 + $0x20] sm:$0xff]  ;;  %v305_v11 = vsel %vm295_vm0, %v677_v4, 0.0  ;;  %v31_v12 = vand.u32 2147483647, %v692_v9 }
   0x4   :  { %v705_v13 = vld [vmem:[%s1078_s0 + $0x10] sm:$0xff]  ;;  %v308_v16 = vsel %vm295_vm0, %v697_v10, 0.0  ;;  %v713_v19 = vld [vmem:[%s1079_s1 + $0x28] sm:$0xff]  ;;  %v718_v21 = vld [vmem:[%s1078_s0 + $0x18] sm:$0xff] }
   0x5   :  { %v40_v14 = vsub.f32 0.0, %v32_v8  ;;  %v39_v15 = vsub.f32 0.0, %v31_v12  ;;  %v33_v18 = vand.u32 2147483647, %v705_v13 }
   0x7   :  { %300 = vadd.xlane.f32.xlu0 %v299_v7  ;;  %306 = vadd.xlane.f32.xlu1 %v305_v11  ;;  %v49_v17 = vmul.f32 1.442695, %v40_v14  ;;  %v47_v20 = vmul.f32 1.442695, %v39_v15  ;;  %v41_v22 = vsub.f32 0.0, %v33_v18 }
   0x9   :  { %538 = vpow2.f32 %v49_v17 }
   0xa   :  { %10 = vsyncpa [#allocation5], 0  ;;  %v723_v23 = vld [vmem:[%s1079_s1 + $0x30] sm:$0xff]  ;;  %540 = vpow2.f32 %v47_v20  ;;  %v311_v24 = vsel %vm295_vm0, %v713_v19, 0.0  ;;  %v51_v25 = vmul.f32 1.442695, %v41_v22  ;;  %v200_v37 = vmul.f32 %v665_v1, %v684_v6 }
   0xb   :  { %309 = vadd.xlane.f32.xlu0 %v308_v16  ;;  %v34_v26 = vand.u32 2147483647, %v718_v21  ;;  %v731_v27 = vld [vmem:[%s1078_s0 + $0x30] sm:$0xff]  ;;  %v128_v28 = vsub.f32 1.0, %v665_v1  ;;  %v314_v29 = vsel %vm295_vm0, %v723_v23, 0.0  ;;  %v127_v30 = vsub.f32 1.0, %v660_v0 }
   0xc   :  { %542 = vpow2.f32 %v51_v25  ;;  %v160_v32 = vmul.f32 0.25, %v665_v1  ;;  %v192_v34 = vmax.f32 %v684_v6, 0.0  ;;  %v37_v35 = vand.u32 2147483647, %v731_v27  ;;  %v745_v36 = vld [vmem:[%s1078_s0 + $0x20] sm:$0xff]  ;;  %v774_v55 = vld [vmem:[%s1079_s1 + $0x38] sm:$0xff] }
   0xd   :  { %v42_v31 = vsub.f32 0.0, %v34_v26  ;;  %v168_v33 = vmul.f32 0.75, %v128_v28  ;;  %v159_v38 = vmul.f32 0.25, %v660_v0  ;;  %v167_v39 = vmul.f32 0.75, %v127_v30  ;;  %v797_v8 = vld [vmem:[%s1078_s0 + $0x28] sm:$0xff] }
   0xe   :  { %v191_v41 = vmax.f32 %v692_v9, 0.0  ;;  %v199_v42 = vmul.f32 %v660_v0, %v692_v9  ;;  %v129_v43 = vsub.f32 1.0, %v672_v3  ;;  %v45_v44 = vsub.f32 0.0, %v37_v35 }
   0xf   :  { %312 = vadd.xlane.f32.xlu0 %v311_v24  ;;  %v53_v40 = vmul.f32 1.442695, %v42_v31  ;;  %v161_v45 = vmul.f32 0.25, %v672_v3  ;;  %v35_v46 = vand.u32 2147483647, %v745_v36  ;;  %v193_v48 = vmax.f32 %v705_v13, 0.0 }
  0x10   :  { %v169_v47 = vmul.f32 0.75, %v129_v43  ;;  %v201_v49 = vmul.f32 %v672_v3, %v705_v13  ;;  %v59_v50 = vmul.f32 1.442695, %v45_v44  ;;  %v765_v52 = vadd.f32 %v168_v33, %v160_v32 }
  0x11   :  { %544 = vpow2.f32 %v53_v40  ;;  %v767_v53 = vsub.f32 %v192_v34, %v200_v37  ;;  %v769_v54 = vadd.f32 %v167_v39, %v159_v38  ;;  %v779_v58 = vsub.f32 %v191_v41, %v199_v42 }
  0x12   :  { %v130_v59 = vsub.f32 1.0, %v677_v4  ;;  %546 = vpow2.f32 %v59_v50  ;;  %v194_v61 = vmax.f32 %v718_v21, 0.0  ;;  %v202_v62 = vmul.f32 %v677_v4, %v718_v21 }
  0x13   :  { %315 = vadd.xlane.f32.xlu0 %v314_v29  ;;  %v763_v51 = vpop.eup %538  ;;  %v43_v63 = vsub.f32 0.0, %v35_v46  ;;  %v786_v2 = vadd.f32 %v169_v47, %v161_v45  ;;  %v788_v5 = vsub.f32 %v193_v48, %v201_v49  ;;  %v792_v7 = vsel %vm295_vm0, %v774_v55, 0.0 }
  0x14   :  { %v776_v56 = vpop.eup %540  ;;  %v64_v57 = vadd.f32 1.0, %v763_v51  ;;  %v162_v12 = vmul.f32 0.25, %v677_v4  ;;  %v170_v14 = vmul.f32 0.75, %v130_v59  ;;  %v133_v15 = vsub.f32 1.0, %v723_v23 }
  0x15   :  { %v63_v60 = vadd.f32 1.0, %v776_v56  ;;  %vm88_vm1 = vcmp.ge.f32.partialorder %v684_v6, 0.0  ;;  %v227_v16 = vmul.f32 -0.5, %v763_v51  ;;  %v218_v17 = vmul.f32 -0.5, %v776_v56 }
  0x16   :  { %548 = vrcp.f32 %v64_v57  ;;  %v799_v11 = vpop.eup %542  ;;  %v809_v20 = vsub.f32 %v194_v61, %v202_v62  ;;  %v55_v22 = vmul.f32 1.442695, %v43_v63  ;;  %v36_v24 = vand.u32 2147483647, %v797_v8 }
  0x17   :  { %550 = vlog2.f32 %v64_v57  ;;  %v65_v18 = vadd.f32 1.0, %v799_v11  ;;  %v230_v25 = vand.u32 2147483647, %v763_v51  ;;  %vm87_vm2 = vcmp.ge.f32.partialorder %v692_v9, 0.0 }
  0x18   :  { %552 = vrcp.f32 %v63_v60  ;;  %v236_v26 = vmul.f32 -0.5, %v799_v11  ;;  %v816_v29 = vmul.f32 0.25, %v723_v23  ;;  %v221_v32 = vand.u32 2147483647, %v776_v56 }
  0x19   :  { %554 = vlog2.f32 %v63_v60  ;;  %v821_v33 = vadd.f32 %v170_v14, %v162_v12  ;;  %v197_v34 = vmax.f32 %v731_v27, 0.0  ;;  %v228_v35 = vadd.f32 1.0, %v227_v16  ;;  %v855_v12 = vld [vmem:[%s1078_s0 + $0x38] sm:$0xff]  ;;  %s635_s0 = smov [#allocation4]  }
  0x1a   :  { %556 = vrcp.f32 %v65_v18  ;;  %v219_v37 = vadd.f32 1.0, %v218_v17  ;;  %vm89_vm3 = vcmp.ge.f32.partialorder %v705_v13, 0.0  ;;  %v239_v40 = vand.u32 2147483647, %v799_v11  ;;  %s515_s16 = sshll.u32 %s635_s0, 4  ;;  %s516_s16 = int_to_ptr.vmem [resolvable:$true] %s515_s16 }
  0x1b   :  { %v818_v31 = vpop.eup %544  ;;  %558 = vlog2.f32 %v65_v18  ;;  %v830_v41 = vmul.f32 0.75, %v133_v15  ;;  %v44_v42 = vsub.f32 0.0, %v36_v24  ;;  %vm834_vm4 = vcmp.lt.f32.partialorder %v230_v25, 0.0004427343  ;;  %s586_s17 = scalar_lea.vmem %s516_s16, 16  ;;  %s590_s18 = scalar_lea.vmem %s516_s16, 32 }
  0x1c   :  { %v66_v38 = vadd.f32 1.0, %v818_v31  ;;  %v245_v39 = vmul.f32 -0.5, %v818_v31  ;;  %560 = vpow2.f32 %v55_v22  ;;  %v832_v44 = vpop.eup %546  ;;  %v237_v46 = vadd.f32 1.0, %v236_v26  ;;  %p587_p0 = scmp.ne.s32.totalorder %s516_s16, %s586_s17  ;;  %p591_p1 = scmp.lt.s32.totalorder %s516_s16, %s516_s16 }
  0x1d   :  { %v840_v47 = vmul.f32 %v723_v23, %v731_v27  ;;  %vm842_vm5 = vcmp.lt.f32.partialorder %v221_v32, 0.0004427343  ;;  %v69_v49 = vadd.f32 1.0, %v832_v44  ;;  %v272_v50 = vmul.f32 -0.5, %v832_v44  ;;  %p592_p2 = scmp.lt.s32.totalorder %s590_s18, %s586_s17 }
  0x1e   :  { %562 = vrcp.f32 %v66_v38  ;;  %v229_v60 = vmul.f32 %v763_v51, %v228_v35  ;;  %v220_v61 = vmul.f32 %v776_v56, %v219_v37  ;;  %vm90_vm6 = vcmp.ge.f32.partialorder %v718_v21, 0.0 }
  0x1f   :  { %564 = vlog2.f32 %v66_v38  ;;  %v246_v62 = vadd.f32 1.0, %v245_v39  ;;  %v248_v63 = vand.u32 2147483647, %v818_v31  ;;  %vm858_vm7 = vcmp.lt.f32.partialorder %v239_v40, 0.0004427343  ;;  %p593_p3 = por %p592_p2, %p591_p1 }
  0x20   :  { %v549_v57 = vpop.eup %548  ;;  %566 = vrcp.f32 %v69_v49  ;;  %v57_v18 = vmul.f32 1.442695, %v44_v42  ;;  %v238_v25 = vmul.f32 %v799_v11, %v237_v46  ;;  %v275_v26 = vand.u32 2147483647, %v832_v44 }
  0x21   :  { %v551_v14 = vpop.eup %550  ;;  %v96_v16 = vmul.f32 %v549_v57, %v763_v51  ;;  %568 = vlog2.f32 %v69_v49  ;;  %v273_v51 = vadd.f32 1.0, %v272_v50  ;;  %v38_v38 = vand.u32 2147483647, %v855_v12  ;;  %p594_p4 = pnand %p593_p3, %p587_p0 }
  0x22   :  { %v553_v22 = vpop.eup %552  ;;  %v226_v24 = vmul.f32 0.6931472, %v551_v14  ;;  %v871_v46 = vmul.f32 %v818_v31, %v246_v62  ;;  %vm873_vm8 = vcmp.lt.f32.partialorder %v248_v63, 0.0004427343  ;;  %vm93_vm9 = vcmp.ge.f32.partialorder %v731_v27, 0.0 }
  0x23   :  { %v555_v32 = vpop.eup %554  ;;  %v104_v35 = vsel %vm88_vm1, %v549_v57, %v96_v16  ;;  %v95_v37 = vmul.f32 %v553_v22, %v776_v56  ;;  %570 = vpow2.f32 %v57_v18  ;;  %v893_v9 = vmul.f32 %v832_v44, %v273_v51 }
  0x24   :  { %v557_v39 = vpop.eup %556  ;;  %v112_v40 = vsub.f32 1.0, %v104_v35  ;;  %v136_v42 = vmul.f32 %v128_v28, %v104_v35  ;;  %v217_v14 = vmul.f32 0.6931472, %v555_v32  ;;  %v232_v56 = vsel %vm834_vm4, %v229_v60, %v226_v24 }
  0x25   :  { %v559_v6 = vpop.eup %558  ;;  %v103_v50 = vsel %vm87_vm2, %v553_v22, %v95_v37  ;;  %v97_v57 = vmul.f32 %v557_v39, %v799_v11  ;;  %v46_v11 = vsub.f32 0.0, %v38_v38  ;;  %vm91_vm10 = vcmp.ge.f32.partialorder %v745_v36, 0.0 }
  0x26   :  { %v120_v28 = vmul.f32 %v112_v40, %v665_v1  ;;  %v111_v62 = vsub.f32 1.0, %v103_v50  ;;  %v135_v63 = vmul.f32 %v127_v30, %v103_v50  ;;  %v223_v16 = vsel %vm842_vm5, %v220_v61, %v217_v14  ;;  %v888_v32 = vpop.eup %560 }
  0x27   :  { %v105_v45 = vsel %vm89_vm3, %v557_v39, %v97_v57  ;;  %v235_v60 = vmul.f32 0.6931472, %v559_v6  ;;  %v288_v61 = vadd.f32 %v232_v56, %v767_v53  ;;  %v287_v35 = vadd.f32 %v223_v16, %v779_v58 }
  0x28   :  { %v563_v18 = vpop.eup %562  ;;  %v144_v22 = vadd.f32 %v136_v42, %v120_v28  ;;  %v119_v1 = vmul.f32 %v111_v62, %v660_v0  ;;  %v113_v24 = vsub.f32 1.0, %v105_v45  ;;  %v137_v30 = vmul.f32 %v129_v43, %v105_v45 }
  0x29   :  { %v565_v48 = vpop.eup %564  ;;  %v98_v13 = vmul.f32 %v563_v18, %v818_v31  ;;  %v67_v37 = vadd.f32 1.0, %v888_v32  ;;  %v241_v0 = vsel %vm858_vm7, %v238_v25, %v235_v60  ;;  %v61_v53 = vmul.f32 1.442695, %v46_v11 }
  0x2a   :  { %v152_v51 = vmul.f32 %v144_v22, %v144_v22  ;;  %v143_v39 = vadd.f32 %v135_v63, %v119_v1  ;;  %v121_v38 = vmul.f32 %v113_v24, %v672_v3  ;;  %v567_v40 = vpop.eup %566  ;;  %v244_v42 = vmul.f32 0.6931472, %v565_v48 }
  0x2b   :  { %v106_v43 = vsel %vm90_vm6, %v563_v18, %v98_v13  ;;  %572 = vrcp.f32 %v67_v37  ;;  %v569_v14 = vpop.eup %568  ;;  %v289_v50 = vadd.f32 %v241_v0, %v788_v5  ;;  %v101_v17 = vmul.f32 %v567_v40, %v832_v44 }
  0x2c   :  { %v184_v58 = vmul.f32 %v765_v52, %v152_v51  ;;  %v151_v31 = vmul.f32 %v143_v39, %v143_v39  ;;  %v145_v6 = vadd.f32 %v137_v30, %v121_v38  ;;  %v114_v56 = vsub.f32 1.0, %v106_v43 }
  0x2d   :  { %v138_v3 = vmul.f32 %v130_v59, %v106_v43  ;;  %v254_v21 = vmul.f32 -0.5, %v888_v32  ;;  %v916_v62 = vpop.eup %570  ;;  %v250_v5 = vsel %vm873_vm8, %v871_v46, %v244_v42  ;;  %v109_v59 = vsel %vm93_vm9, %v567_v40, %v101_v17 }
  0x2e   :  { %v345_v25 = vmul.f32 %v288_v61, %v184_v58  ;;  %v183_v57 = vmul.f32 %v769_v54, %v151_v31  ;;  %v153_v28 = vmul.f32 %v145_v6, %v145_v6  ;;  %v122_v52 = vmul.f32 %v114_v56, %v677_v4 }
  0x2f   :  { %v271_v63 = vmul.f32 0.6931472, %v569_v14  ;;  %574 = vlog2.f32 %v67_v37  ;;  %v117_v11 = vsub.f32 1.0, %v109_v59  ;;  %v141_v4 = vmul.f32 %v133_v15, %v109_v59 }
  0x30   :  { %v355_v16 = vsel %vm295_vm0, %v345_v25, 0.0  ;;  %v344_v45 = vmul.f32 %v287_v35, %v183_v57  ;;  %v185_v60 = vmul.f32 %v786_v2, %v153_v28  ;;  %v146_v54 = vadd.f32 %v138_v3, %v122_v52 }
  0x31   :  { %356 = vadd.xlane.f32.xlu1 %v355_v16  ;;  %vm929_vm11 = vcmp.lt.f32.partialorder %v275_v26, 0.0004427343  ;;  %v131_v49 = vsub.f32 1.0, %v697_v10  ;;  %v290_v2 = vadd.f32 %v250_v5, %v809_v20  ;;  %v125_v24 = vmul.f32 %v117_v11, %v723_v23 }
  0x32   :  { %v352_v18 = vsel %vm295_vm0, %v344_v45, 0.0  ;;  %v346_v22 = vmul.f32 %v289_v50, %v185_v60  ;;  %v154_v1 = vmul.f32 %v146_v54, %v146_v54  ;;  %v213_v15 = vsub.f32 %v197_v34, %v840_v47 }
  0x33   :  { %353 = vadd.xlane.f32.xlu0 %v352_v18  ;;  %v255_v44 = vadd.f32 1.0, %v254_v21  ;;  %v68_v26 = vadd.f32 1.0, %v916_v62  ;;  %v277_v61 = vsel %vm929_vm11, %v893_v9, %v271_v63  ;;  %576 = vpow2.f32 %v61_v53 }
  0x34   :  { %v358_v30 = vsel %vm295_vm0, %v346_v22, 0.0  ;;  %v186_v48 = vmul.f32 %v821_v33, %v154_v1  ;;  %v149_v35 = vadd.f32 %v141_v4, %v125_v24  ;;  %v181_v23 = vadd.f32 %v830_v41, %v816_v29 }
  0x35   :  { %v573_v20 = vpop.eup %572  ;;  %359 = vadd.xlane.f32.xlu1 %v358_v30  ;;  %v257_v27 = vand.u32 2147483647, %v888_v32  ;;  %578 = vrcp.f32 %v68_v26  ;;  %v163_v13 = vmul.f32 0.25, %v697_v10  ;;  %v293_v9 = vadd.f32 %v277_v61, %v213_v15 }
  0x36   :  { %v347_v34 = vmul.f32 %v290_v2, %v186_v48  ;;  %v99_v47 = vmul.f32 %v573_v20, %v888_v32  ;;  %580 = vlog2.f32 %v68_v26  ;;  %v157_v33 = vmul.f32 %v149_v35, %v149_v35 }
  0x37   :  { %318 = vadd.xlane.f32.xlu0 %v792_v7  ;;  %v195_v37 = vmax.f32 %v745_v36, 0.0  ;;  %v203_v51 = vmul.f32 %v697_v10, %v745_v36  ;;  %v171_v39 = vmul.f32 0.75, %v131_v49  ;;  %v256_v38 = vmul.f32 %v888_v32, %v255_v44 }
  0x38   :  { %v361_v29 = vsel %vm295_vm0, %v347_v34, 0.0  ;;  %v107_v41 = vsel %vm91_vm10, %v573_v20, %v99_v47  ;;  %v189_v40 = vmul.f32 %v181_v23, %v157_v33  ;;  %vm959_vm12 = vcmp.lt.f32.partialorder %v257_v27, 0.0004427343 }
  0x39   :  { %v575_v0 = vpop.eup %574  ;;  %362 = vadd.xlane.f32.xlu1 %v361_v29  ;;  %v115_v43 = vsub.f32 1.0, %v107_v41  ;;  %v139_v7 = vmul.f32 %v131_v49, %v107_v41  ;;  %v263_v14 = vmul.f32 -0.5, %v916_v62  ;;  %v211_v36 = vsub.f32 %v195_v37, %v203_v51 }
  0x3a   :  { %v253_v53 = vmul.f32 0.6931472, %v575_v0  ;;  %v350_v58 = vmul.f32 %v293_v9, %v189_v40  ;;  %v179_v50 = vadd.f32 %v171_v39, %v163_v13  ;;  %vm92_vm13 = vcmp.ge.f32.partialorder %v797_v8, 0.0 }
  0x3b   :  { %v123_v31 = vmul.f32 %v115_v43, %v697_v10  ;;  %v132_v17 = vsub.f32 1.0, %v713_v19  ;;  %v264_v21 = vadd.f32 1.0, %v263_v14  ;;  %v266_v10 = vand.u32 2147483647, %v916_v62 }
  0x3c   :  { %v259_v6 = vsel %vm959_vm12, %v256_v38, %v253_v53  ;;  %v370_v32 = vsel %vm295_vm0, %v350_v58, 0.0  ;;  %v164_v63 = vmul.f32 0.25, %v713_v19  ;;  %v196_v60 = vmax.f32 %v797_v8, 0.0 }
  0x3d   :  { %v147_v56 = vadd.f32 %v139_v7, %v123_v31  ;;  %v577_v3 = vpop.eup %576  ;;  %371 = vadd.xlane.f32.xlu0 %v370_v32  ;;  %v291_v28 = vadd.f32 %v259_v6, %v211_v36  ;;  %v172_v16 = vmul.f32 0.75, %v132_v17  ;;  %v204_v54 = vmul.f32 %v713_v19, %v797_v8 }
  0x3e   :  { %v70_v52 = vadd.f32 1.0, %v577_v3  ;;  %v265_v46 = vmul.f32 %v916_v62, %v264_v21  ;;  %vm267_vm14 = vcmp.lt.f32.partialorder %v266_v10, 0.0004427343  ;;  %v281_v44 = vmul.f32 -0.5, %v577_v3 }
  0x3f   :  { %v579_v25 = vpop.eup %578  ;;  %v155_v57 = vmul.f32 %v147_v56, %v147_v56  ;;  %v212_v24 = vsub.f32 %v196_v60, %v204_v54  ;;  %v180_v30 = vadd.f32 %v172_v16, %v164_v63  ;;  %vm94_vm15 = vcmp.ge.f32.partialorder %v855_v12, 0.0 }
  0x40   :  { %v581_v5 = vpop.eup %580  ;;  %v100_v59 = vmul.f32 %v579_v25, %v916_v62  ;;  %582 = vrcp.f32 %v70_v52  ;;  %v282_v61 = vadd.f32 1.0, %v281_v44  ;;  %v134_v35 = vsub.f32 1.0, %v774_v55 }
  0x41   :  { %v187_v45 = vmul.f32 %v179_v50, %v155_v57  ;;  %v262_v4 = vmul.f32 0.6931472, %v581_v5  ;;  %584 = vlog2.f32 %v70_v52  ;;  %v284_v23 = vand.u32 2147483647, %v577_v3 }
  0x42   :  { %v108_v11 = vsel %vm92_vm13, %v579_v25, %v100_v59  ;;  %v198_v13 = vmax.f32 %v855_v12, 0.0  ;;  %v206_v33 = vmul.f32 %v774_v55, %v855_v12  ;;  %v174_v37 = vmul.f32 0.75, %v134_v35 }
  0x43   :  { %v348_v49 = vmul.f32 %v291_v28, %v187_v45  ;;  %v116_v18 = vsub.f32 1.0, %v108_v11  ;;  %v140_v22 = vmul.f32 %v132_v17, %v108_v11  ;;  %v268_v15 = vsel %vm267_vm14, %v265_v46, %v262_v4 }
  0x44   :  { %v292_v48 = vadd.f32 %v268_v15, %v212_v24  ;;  %v283_v29 = vmul.f32 %v577_v3, %v282_v61  ;;  %vm285_vm1 = vcmp.lt.f32.partialorder %v284_v23, 0.0004427343  ;;  %v214_v40 = vsub.f32 %v198_v13, %v206_v33 }
  0x45   :  { %v364_v1 = vsel %vm295_vm0, %v348_v49, 0.0  ;;  %v124_v2 = vmul.f32 %v116_v18, %v713_v19  ;;  %v166_v19 = vmul.f32 0.25, %v774_v55  ;;  %v392_v6 = vlaneseq }
  0x46   :  { %365 = vadd.xlane.f32.xlu1 %v364_v1  ;;  %v634_v10 = vmov 0.0   ;;  %vm403_vm5 = vcmask 130112   ;;  %vm410_vm7 = vcmask 195712   ;;  %vm417_vm9 = vcmask 261312  }
  0x47   :  { %v148_v26 = vadd.f32 %v140_v22, %v124_v2  ;;  %v182_v42 = vadd.f32 %v174_v37, %v166_v19  ;;  %v393_v56 = vand.u32 127, %v392_v6  ;;  %vm424_vm11 = vcmask 326912  }
  0x48   :  { %vm431_vm12 = vcmask 392512   ;;  %vm438_vm14 = vcmask 458112  }
  0x49   :  { %v156_v8 = vmul.f32 %v148_v26, %v148_v26  ;;  %v398_v17 = vadd.s32 4294967288, %v393_v56  ;;  %v412_v59 = vadd.s32 4294967272, %v393_v56  ;;  %v419_v11 = vadd.s32 4294967264, %v393_v56 }
  0x4a   :  { %v583_v20 = vpop.eup %582  ;;  %v426_v22 = vadd.s32 4294967256, %v393_v56  ;;  %v433_v26 = vadd.s32 4294967248, %v393_v56 }
  0x4b   :  { %v188_v62 = vmul.f32 %v180_v30, %v156_v8  ;;  %v585_v27 = vpop.eup %584  ;;  %v102_v34 = vmul.f32 %v583_v20, %v577_v3  ;;  %v395_v3 = vshrl.u32 %v392_v6, 7 }
  0x4c   :  { %v280_v51 = vmul.f32 0.6931472, %v585_v27 }
  0x4d   :  { %v349_v47 = vmul.f32 %v292_v48, %v188_v62  ;;  %v110_v9 = vsel %vm94_vm15, %v583_v20, %v102_v34  ;;  %v990_v25 = vsub.s32 %v398_v17, %v395_v3  ;;  %v992_v57 = vsub.s32 %v393_v56, %v395_v3 }
  0x4e   :  { %v118_v39 = vsub.f32 1.0, %v110_v9  ;;  %v142_v38 = vmul.f32 %v134_v35, %v110_v9  ;;  %v286_v43 = vsel %vm285_vm1, %v283_v29, %v280_v51  ;;  %v1006_v4 = vsub.s32 %v412_v59, %v395_v3 }
  0x4f   :  { %v367_v41 = vsel %vm295_vm0, %v349_v47, 0.0  ;;  %v294_v14 = vadd.f32 %v286_v43, %v214_v40  ;;  %v1013_v2 = vsub.s32 %v419_v11, %v395_v3  ;;  %v1018_v30 = vsub.s32 %v426_v22, %v395_v3 }
  0x50   :  { %368 = vadd.xlane.f32.xlu1 %v367_v41  ;;  %v126_v0 = vmul.f32 %v118_v39, %v774_v55  ;;  %v405_v55 = vadd.s32 4294967280, %v393_v56  ;;  %v440_v20 = vadd.s32 4294967240, %v393_v56  ;;  %v1022_v35 = vsub.s32 %v433_v26, %v395_v3 }
  0x51   :  { %vm445_vm15 = vcmask 523712   ;;  %vm448_vm1 = vcmask 516096  }
  0x52   :  { %v150_v7 = vadd.f32 %v142_v38, %v126_v0  ;;  %v998_v16 = vsub.s32 %v405_v55, %v395_v3  ;;  %v1026_v47 = vsub.s32 %v440_v20, %v395_v3 }
  0x54   :  { %v158_v53 = vmul.f32 %v150_v7, %v150_v7 }
  0x56   :  { %v190_v58 = vmul.f32 %v182_v42, %v158_v53 }
  0x58   :  { %v351_v12 = vmul.f32 %v294_v14, %v190_v58 }
  0x5a   :  { %v373_v31 = vsel %vm295_vm0, %v351_v12, 0.0 }
  0x5b   :  { %374 = vadd.xlane.f32.xlu1 %v373_v31 }
  0x90   :  { %v298_v36 = vpop.xlane.xlu0 %297  ;;  %v304_v50 = vpop.xlane.xlu1 %303 }
  0x91   :  { %vm320_vm2 = vcmp.gt.f32.partialorder %v298_v36, 0.0  ;;  %vm322_vm4 = vcmp.gt.f32.partialorder %v304_v50, 0.0 }
  0x92   :  { %v996_v5 = vsel %vm320_vm2, 1.0, %v634_v10  ;;  %v1004_v54 = vsel %vm322_vm4, 1.0, %v634_v10 }
  0x93   :  { %v461_v60 = vrot.slane %v996_v5, %v992_v57  ;;  %v470_v46 = vrot.slane %v1004_v54, %v998_v16 }
  0x94   :  { %v301_v32 = vpop.xlane.xlu0 %300  ;;  %v307_v28 = vpop.xlane.xlu1 %306 }
  0x95   :  { %vm321_vm3 = vcmp.gt.f32.partialorder %v301_v32, 0.0  ;;  %vm323_vm0 = vcmp.gt.f32.partialorder %v307_v28, 0.0 }
  0x96   :  { %v994_v52 = vsel %vm321_vm3, 1.0, %v634_v10  ;;  %v1010_v49 = vsel %vm323_vm0, 1.0, %v634_v10 }
  0x97   :  { %v465_v45 = vrot.slane %v994_v52, %v990_v25  ;;  %v475_v24 = vrot.slane %v1010_v49, %v1006_v4 }
  0x98   :  { %v310_v21 = vpop.xlane.xlu0 %309 }
  0x99   :  { %vm324_vm6 = vcmp.gt.f32.partialorder %v310_v21, 0.0  ;;  %v466_v18 = vsel %vm403_vm5, %v465_v45, %v461_v60 }
  0x9a   :  { %v531_v15 = vsel %vm324_vm6, 1.0, %v634_v10  ;;  %v471_v44 = vsel %vm410_vm7, %v470_v46, %v466_v18 }
  0x9b   :  { %v480_v8 = vrot.slane %v531_v15, %v1013_v2  ;;  %v476_v61 = vsel %vm417_vm9, %v475_v24, %v471_v44 }
  0x9c   :  { %v313_v63 = vpop.xlane.xlu0 %312 }
  0x9d   :  { %vm325_vm8 = vcmp.gt.f32.partialorder %v313_v63, 0.0  ;;  %v481_v34 = vsel %vm424_vm11, %v480_v8, %v476_v61 }
  0x9e   :  { %v532_v48 = vsel %vm325_vm8, 1.0, %v634_v10 }
  0x9f   :  { %v485_v27 = vrot.slane %v532_v48, %v1018_v30 }
  0xa0   :  { %v316_v1 = vpop.xlane.xlu0 %315 }
  0xa1   :  { %vm326_vm10 = vcmp.gt.f32.partialorder %v316_v1, 0.0  ;;  %v486_v33 = vsel %vm431_vm12, %v485_v27, %v481_v34 }
  0xa2   :  { %v533_v23 = vsel %vm326_vm10, 1.0, %v634_v10 }
  0xa3   :  { %v490_v13 = vrot.slane %v533_v23, %v1022_v35 }
  0xa5   :  { %v491_v29 = vsel %vm438_vm14, %v490_v13, %v486_v33 }
  0xbe   :  { %v357_v37 = vpop.xlane.xlu1 %356 }
  0xc0   :  { %v354_v62 = vpop.xlane.xlu0 %353 }
  0xc4   :  { %v319_v19 = vpop.xlane.xlu0 %318 }
  0xc5   :  { %vm327_vm13 = vcmp.gt.f32.partialorder %v319_v19, 0.0 }
  0xc6   :  { %v534_v9 = vsel %vm327_vm13, 1.0, %v634_v10 }
  0xc7   :  { %v495_v51 = vrot.slane %v534_v9, %v1026_v47 }
  0xc9   :  { %v496_v41 = vsel %vm445_vm15, %v495_v51, %v491_v29 }
  0xca   :  { %498 = vst.msk [vmem:[#allocation4] sm:$0x1] %vm448_vm1, %v496_v41 }
  0xcb   :  { %597 = shalt.err (!%p594_p4)
}
  0xcc   :  { %s598_s21 = scalar_lea.hbm %s1081_s3, 16 }
  0xcd   :  { %p599_p5 = scmp.ne.s32.totalorder %s1081_s3, %s598_s21  ;;  %p602_p6 = scmp.lt.u32.totalorder %s598_s21, %s1081_s3 }
  0xcf   :  { %p604_p7 = pnand %p602_p6, %p599_p5 }
  0xd1   :  { %607 = shalt.err (!%p604_p7)
}
  0xd2   :  { %518 = dma.vmem_to_hbm [thread:$0]  %s516_s16, 16, %s1081_s3, [#allocation5]   ;;  %v360_v39 = vpop.xlane.xlu1 %359  ;;  %v377_v40 = vmul.f32 %v994_v52, %v357_v37  ;;  %v376_v43 = vmul.f32 %v996_v5, %v354_v62  ;;  %v372_v32 = vpop.xlane.xlu0 %371 }
  0xd3   :  { %v378_v7 = vmul.f32 %v1004_v54, %v360_v39  ;;  %v382_v21 = vmul.f32 %v533_v23, %v372_v32  ;;  %s636_s3 = smov [#allocation2]  }
  0xd4   :  { %v402_v58 = vrot.slane %v377_v40, %v990_v25  ;;  %v397_v12 = vrot.slane %v376_v43, %v992_v57  ;;  %s505_s28 = sshll.u32 %s636_s3, 4  ;;  %s506_s28 = int_to_ptr.vmem [resolvable:$true] %s505_s28 }
  0xd5   :  { %v409_v36 = vrot.slane %v378_v7, %v998_v16  ;;  %v437_v52 = vrot.slane %v382_v21, %v1022_v35  ;;  %s608_s29 = scalar_lea.vmem %s506_s28, 16  ;;  %s612_s30 = scalar_lea.vmem %s506_s28, 32 }
  0xd6   :  { %v363_v38 = vpop.xlane.xlu1 %362  ;;  %v404_v50 = vsel %vm403_vm5, %v402_v58, %v397_v12  ;;  %p609_p8 = scmp.ne.s32.totalorder %s506_s28, %s608_s29  ;;  %p613_p9 = scmp.lt.s32.totalorder %s506_s28, %s506_s28 }
  0xd7   :  { %v379_v53 = vmul.f32 %v1010_v49, %v363_v38  ;;  %v411_v17 = vsel %vm410_vm7, %v409_v36, %v404_v50  ;;  %p614_p10 = scmp.lt.s32.totalorder %s612_s30, %s608_s29 }
  0xd9   :  { %v416_v6 = vrot.slane %v379_v53, %v1006_v4  ;;  %p615_p11 = por %p614_p10, %p613_p9 }
  0xda   :  { %v366_v0 = vpop.xlane.xlu1 %365 }
  0xdb   :  { %v380_v14 = vmul.f32 %v531_v15, %v366_v0  ;;  %v418_v55 = vsel %vm417_vm9, %v416_v6, %v411_v17  ;;  %p616_p12 = pnand %p615_p11, %p609_p8 }
  0xdd   :  { %v423_v56 = vrot.slane %v380_v14, %v1013_v2 }
  0xde   :  { %v369_v42 = vpop.xlane.xlu1 %368 }
  0xdf   :  { %v381_v31 = vmul.f32 %v532_v48, %v369_v42  ;;  %v425_v25 = vsel %vm424_vm11, %v423_v56, %v418_v55 }
  0xe1   :  { %v430_v3 = vrot.slane %v381_v31, %v1018_v30 }
  0xe3   :  { %v432_v10 = vsel %vm431_vm12, %v430_v3, %v425_v25 }
  0xe4   :  { %v439_v59 = vsel %vm438_vm14, %v437_v52, %v432_v10 }
  0xe8   :  { %v375_v57 = vpop.xlane.xlu1 %374 }
  0xe9   :  { %v383_v28 = vmul.f32 %v534_v9, %v375_v57 }
  0xeb   :  { %v444_v5 = vrot.slane %v383_v28, %v1026_v47 }
  0xed   :  { %v446_v63 = vsel %vm445_vm15, %v444_v5, %v439_v59 }
  0xee   :  { %449 = vst.msk [vmem:[#allocation2] sm:$0x1] %vm448_vm1, %v446_v63 }
  0xef   :  { %619 = shalt.err (!%p616_p12)
}
  0xf0   :  { %s620_s6 = scalar_lea.hbm %s1080_s2, 16 }
  0xf1   :  { %p621_p13 = scmp.ne.s32.totalorder %s1080_s2, %s620_s6  ;;  %p624_p0 = scmp.lt.u32.totalorder %s620_s6, %s1080_s2 }
  0xf3   :  { %p626_p1 = pnand %p624_p0, %p621_p13 }
  0xf5   :  { %629 = shalt.err (!%p626_p1)
}
  0xf6   :  { %508 = dma.vmem_to_hbm [thread:$0]  %s506_s28, 16, %s1080_s2, [#allocation3]  }
  0xf7   :  { %630 = dma.done.wait [#allocation3], 16  }
  0xf8   :  { %631 = vsyncadd [#allocation3], 4294967280 }
  0xf9   :  { %632 = dma.done.wait [#allocation5], 16  }
  0xfa   :  { %633 = vsyncadd [#allocation5], 4294967280 }
  0xfb   :  { %525 = vsyncpa [#allocation3], 1 }
  0xfc   :  { %526 = vsyncpa [#allocation5], 1 }

</bundles_post_ra>
